<compile_context>
chip_gen: v6e
topology: v6e:2x2x1
jax: 0.10.0
libtpu: 0.0.40
codegen_flags: <defaults>
</compile_context>

<pallas_src>
import jax
import jax.numpy as jnp
from jax.experimental import pallas as pl
from jax.experimental.pallas import tpu as pltpu

_LANE = 128  # TPU lane width; pad the narrow action dim up to this


def mlp_kernel(x_ref, w1_ref, b1_ref, w2_ref, b2_ref, w3_ref, b3_ref, o_ref):
    # x_ref:  (TB, D_in)        bf16
    # w1_ref: (D_in, 128) bf16,  b1_ref: (1, 128) f32
    # w2_ref: (128, 256)  bf16,  b2_ref: (1, 256) f32
    # w3_ref: (256, A_pad) bf16, b3_ref: (1, A_pad) f32
    # o_ref:  (TB, A_pad)       f32 (lane-dense, A_pad is a multiple of 128)
    x = x_ref[...]

    # bf16 x bf16 on the MXU, accumulate in f32, bias-add + ReLU in f32,
    # then drop back to bf16 for the next MXU pass (halves vreg/store pressure).
    h1 = jnp.dot(x, w1_ref[...], preferred_element_type=jnp.float32) + b1_ref[...]
    h1 = jnp.maximum(h1, 0.0).astype(jnp.bfloat16)

    h2 = jnp.dot(h1, w2_ref[...], preferred_element_type=jnp.float32) + b2_ref[...]
    h2 = jnp.maximum(h2, 0.0).astype(jnp.bfloat16)

    out = jnp.dot(h2, w3_ref[...], preferred_element_type=jnp.float32) + b3_ref[...]
    o_ref[...] = out.astype(o_ref.dtype)


def neural_model_forward(x, params, number_actions, *, tb=256):
    """Forward pass of NeuralModel: Linear->ReLU->Linear->ReLU->Linear.

    Dropout in the module's __init__ is never applied in forward(), so it is
    intentionally omitted.

    Performance structure:
      - batch tiled at tb=256 rows (fills the 256-row MXU geometry on v6e/v7x,
        still a multiple of 128 sublane-pairs on v5e) with a multi-step grid so
        the pipeline engages and v7x's two TensorCores split the work.
      - weights/biases are full-array constant-index blocks -> VMEM resident
        (~75 KB total in bf16, trivial even on v7x's 64 MiB VMEM).
      - the action head is padded to 128 lanes -> unmasked, lane-dense stores.
    """
    w1, b1, w2, b2, w3, b3 = params
    B, d_in = x.shape
    h1 = w1.shape[1]
    h2 = w2.shape[1]
    a_pad = w3.shape[1]
    assert a_pad % _LANE == 0, "action head must be padded to a multiple of 128"
    assert number_actions <= a_pad

    # Pad the batch up to a multiple of the batch tile (extra rows are dead work
    # on zeros and get sliced off below).
    n_tiles = pl.cdiv(B, tb)
    b_pad = n_tiles * tb
    if b_pad != B:
        x = jnp.pad(x, ((0, b_pad - B), (0, 0)))
    x = x.astype(jnp.bfloat16)

    grid = (n_tiles,)

    flops = 2 * b_pad * (d_in * h1 + h1 * h2 + h2 * a_pad)
    bytes_accessed = (
        b_pad * d_in * 2                      # x (bf16)
        + (w1.size + w2.size + w3.size) * 2   # weights (bf16)
        + (b1.size + b2.size + b3.size) * 4   # biases (f32)
        + b_pad * a_pad * 4                   # output (f32)
    )

    out = pl.pallas_call(
        mlp_kernel,
        out_shape=jax.ShapeDtypeStruct((b_pad, a_pad), jnp.float32),
        grid_spec=pltpu.PrefetchScalarGridSpec(
            num_scalar_prefetch=0,
            grid=grid,
            in_specs=[
                pl.BlockSpec((tb, d_in), lambda i: (i, 0)),    # x tile over batch
                pl.BlockSpec((d_in, h1), lambda i: (0, 0)),    # w1 (full, resident)
                pl.BlockSpec((1, h1), lambda i: (0, 0)),       # b1
                pl.BlockSpec((h1, h2), lambda i: (0, 0)),      # w2
                pl.BlockSpec((1, h2), lambda i: (0, 0)),       # b2
                pl.BlockSpec((h2, a_pad), lambda i: (0, 0)),   # w3 (lane-padded)
                pl.BlockSpec((1, a_pad), lambda i: (0, 0)),    # b3 (lane-padded)
            ],
            out_specs=pl.BlockSpec((tb, a_pad), lambda i: (i, 0)),
        ),
        compiler_params=pltpu.CompilerParams(
            dimension_semantics=("parallel",),
        ),
        cost_estimate=pl.CostEstimate(
            flops=flops, transcendentals=0, bytes_accessed=bytes_accessed
        ),
    )(x, w1, b1, w2, b2, w3, b3)

    return out[:B, :number_actions]


def init_params(key, input_size, number_actions):
    """Deterministic init matching the module's layer shapes.

    PyTorch nn.Linear stores weight as (out, in); we create (out, in), transpose
    to (in, out), cast weights to bf16 for the MXU, and zero-pad the decision
    layer's output dim up to a multiple of 128 lanes.
    """
    keys = jax.random.split(key, 6)

    def linear(kw, kb, fan_in, fan_out, pad_out=None):
        bound = 1.0 / jnp.sqrt(fan_in)
        w = jax.random.uniform(kw, (fan_out, fan_in), jnp.float32, -bound, bound)
        b = jax.random.uniform(kb, (fan_out,), jnp.float32, -bound, bound)
        w_t = w.T                                   # (in, out)
        b_r = b.reshape(1, fan_out)                 # (1, out)
        if pad_out is not None and pad_out > fan_out:
            w_t = jnp.pad(w_t, ((0, 0), (0, pad_out - fan_out)))
            b_r = jnp.pad(b_r, ((0, 0), (0, pad_out - fan_out)))
        return w_t.astype(jnp.bfloat16), b_r.astype(jnp.float32)

    a_pad = ((number_actions + _LANE - 1) // _LANE) * _LANE
    w1, b1 = linear(keys[0], keys[1], input_size, 128)
    w2, b2 = linear(keys[2], keys[3], 128, 256)
    w3, b3 = linear(keys[4], keys[5], 256, number_actions, pad_out=a_pad)
    return (w1, b1, w2, b2, w3, b3)


if __name__ == "__main__":
    input_size = 32
    number_actions = 8
    batch = 1024       # multi-step grid: 1024 / tb(256) = 4 batch tiles
    tb = 256

    key = jax.random.PRNGKey(0)
    k_x, k_p = jax.random.split(key)

    x = jax.random.normal(k_x, (batch, input_size), dtype=jnp.float32)
    params = init_params(k_p, input_size, number_actions)

    out = neural_model_forward(x, params, number_actions, tb=tb)
    out = jax.block_until_ready(out)

    # Reference check in plain JAX following the same bf16-in / f32-accumulate path.
    w1, b1, w2, b2, w3, b3 = params
    xb = x.astype(jnp.bfloat16)
    r = jnp.dot(xb, w1, preferred_element_type=jnp.float32) + b1
    r = jnp.maximum(r, 0.0).astype(jnp.bfloat16)
    r = jnp.dot(r, w2, preferred_element_type=jnp.float32) + b2
    r = jnp.maximum(r, 0.0).astype(jnp.bfloat16)
    r = jnp.dot(r, w3, preferred_element_type=jnp.float32) + b3
    ref = r[:, :number_actions]

    assert out.shape == (batch, number_actions)
    assert jnp.allclose(out, ref, atol=1e-3, rtol=1e-3)

    print("KERNEL_OK")
</pallas_src>

<mosaic_0001>
module attributes {stable_mosaic.version = 11 : i64} {
  func.func @mlp_kernel(%arg0: i32, %arg1: memref<256x32xbf16, #tpu.memory_space<vmem>>, %arg2: memref<32x128xbf16, #tpu.memory_space<vmem>>, %arg3: memref<1x128xf32, #tpu.memory_space<vmem>>, %arg4: memref<128x256xbf16, #tpu.memory_space<vmem>>, %arg5: memref<1x256xf32, #tpu.memory_space<vmem>>, %arg6: memref<256x128xbf16, #tpu.memory_space<vmem>>, %arg7: memref<1x128xf32, #tpu.memory_space<vmem>>, %arg8: memref<256x128xf32, #tpu.memory_space<vmem>>) attributes {dimension_semantics = [#tpu.dimension_semantics<parallel>], iteration_bounds = array<i64: 4>, scalar_prefetch = 0 : i64, scratch_operands = 0 : i64, tpu.core_type = #tpu.core_type<tc>, window_params = [{transform_indices = @transform_0, window_bounds = array<i64: 256, 32>}, {pipeline_mode = #tpu.pipeline_mode<synchronous>, transform_indices = @transform_1, window_bounds = array<i64: 32, 128>}, {pipeline_mode = #tpu.pipeline_mode<synchronous>, transform_indices = @transform_2, window_bounds = array<i64: 1, 128>}, {pipeline_mode = #tpu.pipeline_mode<synchronous>, transform_indices = @transform_3, window_bounds = array<i64: 128, 256>}, {pipeline_mode = #tpu.pipeline_mode<synchronous>, transform_indices = @transform_4, window_bounds = array<i64: 1, 256>}, {pipeline_mode = #tpu.pipeline_mode<synchronous>, transform_indices = @transform_5, window_bounds = array<i64: 256, 128>}, {pipeline_mode = #tpu.pipeline_mode<synchronous>, transform_indices = @transform_6, window_bounds = array<i64: 1, 128>}, {transform_indices = @transform_7, window_bounds = array<i64: 256, 128>}]} {
    %c0 = arith.constant 0 : index
    %c0_0 = arith.constant 0 : index
    %0 = vector.load %arg1[%c0, %c0_0] : memref<256x32xbf16, #tpu.memory_space<vmem>>, vector<256x32xbf16>
    %c0_1 = arith.constant 0 : index
    %c0_2 = arith.constant 0 : index
    %1 = vector.load %arg2[%c0_1, %c0_2] : memref<32x128xbf16, #tpu.memory_space<vmem>>, vector<32x128xbf16>
    %cst = arith.constant dense<0.000000e+00> : vector<256x128xf32>
    %2 = tpu.matmul %0, %1, %cst {dimension_numbers = #tpu.dot_dimension_numbers<[1], [0], [0], [1], [0, 0, 1, 1], [], []>} : vector<256x32xbf16>, vector<32x128xbf16>, vector<256x128xf32> -> vector<256x128xf32>
    %c0_3 = arith.constant 0 : index
    %c0_4 = arith.constant 0 : index
    %3 = vector.load %arg3[%c0_3, %c0_4] : memref<1x128xf32, #tpu.memory_space<vmem>>, vector<1x128xf32>
    %4 = vector.broadcast %3 : vector<1x128xf32> to vector<256x128xf32>
    %5 = arith.addf %2, %4 : vector<256x128xf32>
    %cst_5 = arith.constant 0.000000e+00 : f32
    %6 = vector.broadcast %cst_5 : f32 to vector<256x128xf32>
    %7 = arith.maximumf %5, %6 : vector<256x128xf32>
    %8 = arith.truncf %7 : vector<256x128xf32> to vector<256x128xbf16>
    %c0_6 = arith.constant 0 : index
    %c0_7 = arith.constant 0 : index
    %9 = vector.load %arg4[%c0_6, %c0_7] : memref<128x256xbf16, #tpu.memory_space<vmem>>, vector<128x256xbf16>
    %cst_8 = arith.constant dense<0.000000e+00> : vector<256x256xf32>
    %10 = tpu.matmul %8, %9, %cst_8 {dimension_numbers = #tpu.dot_dimension_numbers<[1], [0], [0], [1], [0, 0, 1, 1], [], []>} : vector<256x128xbf16>, vector<128x256xbf16>, vector<256x256xf32> -> vector<256x256xf32>
    %c0_9 = arith.constant 0 : index
    %c0_10 = arith.constant 0 : index
    %11 = vector.load %arg5[%c0_9, %c0_10] : memref<1x256xf32, #tpu.memory_space<vmem>>, vector<1x256xf32>
    %12 = vector.broadcast %11 : vector<1x256xf32> to vector<256x256xf32>
    %13 = arith.addf %10, %12 : vector<256x256xf32>
    %cst_11 = arith.constant 0.000000e+00 : f32
    %14 = vector.broadcast %cst_11 : f32 to vector<256x256xf32>
    %15 = arith.maximumf %13, %14 : vector<256x256xf32>
    %16 = arith.truncf %15 : vector<256x256xf32> to vector<256x256xbf16>
    %c0_12 = arith.constant 0 : index
    %c0_13 = arith.constant 0 : index
    %17 = vector.load %arg6[%c0_12, %c0_13] : memref<256x128xbf16, #tpu.memory_space<vmem>>, vector<256x128xbf16>
    %cst_14 = arith.constant dense<0.000000e+00> : vector<256x128xf32>
    %18 = tpu.matmul %16, %17, %cst_14 {dimension_numbers = #tpu.dot_dimension_numbers<[1], [0], [0], [1], [0, 0, 1, 1], [], []>} : vector<256x256xbf16>, vector<256x128xbf16>, vector<256x128xf32> -> vector<256x128xf32>
    %c0_15 = arith.constant 0 : index
    %c0_16 = arith.constant 0 : index
    %19 = vector.load %arg7[%c0_15, %c0_16] : memref<1x128xf32, #tpu.memory_space<vmem>>, vector<1x128xf32>
    %20 = vector.broadcast %19 : vector<1x128xf32> to vector<256x128xf32>
    %21 = arith.addf %18, %20 : vector<256x128xf32>
    %c0_17 = arith.constant 0 : index
    %c0_18 = arith.constant 0 : index
    %22 = vector.load %arg8[%c0_17, %c0_18] : memref<256x128xf32, #tpu.memory_space<vmem>>, vector<256x128xf32>
    tpu.vector_store %arg8[%c0_17, %c0_18], %21 {strides = array<i32>} : memref<256x128xf32, #tpu.memory_space<vmem>>, vector<256x128xf32>,
    return
  }
  func.func @transform_0(%arg0: i32) -> (i32, i32) {
    %c0_i32 = arith.constant 0 : i32
    %c0_i32_0 = arith.constant 0 : i32
    return %arg0, %c0_i32 : i32, i32
  }
  func.func @transform_1(%arg0: i32) -> (i32, i32) {
    %c0_i32 = arith.constant 0 : i32
    %c0_i32_0 = arith.constant 0 : i32
    %c0_i32_1 = arith.constant 0 : i32
    return %c0_i32, %c0_i32_0 : i32, i32
  }
  func.func @transform_2(%arg0: i32) -> (i32, i32) {
    %c0_i32 = arith.constant 0 : i32
    %c0_i32_0 = arith.constant 0 : i32
    %c0_i32_1 = arith.constant 0 : i32
    return %c0_i32, %c0_i32_0 : i32, i32
  }
  func.func @transform_3(%arg0: i32) -> (i32, i32) {
    %c0_i32 = arith.constant 0 : i32
    %c0_i32_0 = arith.constant 0 : i32
    %c0_i32_1 = arith.constant 0 : i32
    return %c0_i32, %c0_i32_0 : i32, i32
  }
  func.func @transform_4(%arg0: i32) -> (i32, i32) {
    %c0_i32 = arith.constant 0 : i32
    %c0_i32_0 = arith.constant 0 : i32
    %c0_i32_1 = arith.constant 0 : i32
    return %c0_i32, %c0_i32_0 : i32, i32
  }
  func.func @transform_5(%arg0: i32) -> (i32, i32) {
    %c0_i32 = arith.constant 0 : i32
    %c0_i32_0 = arith.constant 0 : i32
    %c0_i32_1 = arith.constant 0 : i32
    return %c0_i32, %c0_i32_0 : i32, i32
  }
  func.func @transform_6(%arg0: i32) -> (i32, i32) {
    %c0_i32 = arith.constant 0 : i32
    %c0_i32_0 = arith.constant 0 : i32
    %c0_i32_1 = arith.constant 0 : i32
    return %c0_i32, %c0_i32_0 : i32, i32
  }
  func.func @transform_7(%arg0: i32) -> (i32, i32) {
    %c0_i32 = arith.constant 0 : i32
    %c0_i32_0 = arith.constant 0 : i32
    return %arg0, %c0_i32 : i32, i32
  }
}

</mosaic_0001>

<bundles_post_ra>
// kernel: tpu_custom_call.1
= control target key start
LH: loop header
LB: loop body
LE: loop exit
PB: predicated region body
PF: predicated region fallthrough
CT: control target
= control target key end

     0   :  { %12 = vsyncpa [#allocation3], 0  ;;  %s2369_s0 = inlined_call_operand.vmem [shape: bf16[1024,32], index: 0, kind: input, shape index: {}]   ;;  %s2370_s1 = inlined_call_operand.vmem [shape: bf16[32,128], index: 1, kind: input, shape index: {}]   ;;  %s2371_s2 = inlined_call_operand.vmem [shape: f32[1,128], index: 2, kind: input, shape index: {}]   ;;  %s2372_s3 = inlined_call_operand.vmem [shape: bf16[128,256], index: 3, kind: input, shape index: {}]   ;;  %s2373_s4 = inlined_call_operand.vmem [shape: f32[1,256], index: 4, kind: input, shape index: {}]   ;;  %s2374_s5 = inlined_call_operand.vmem [shape: bf16[256,128], index: 5, kind: input, shape index: {}]   ;;  %s2375_s6 = inlined_call_operand.vmem [shape: f32[1,128], index: 6, kind: input, shape index: {}]   ;;  %s2376_s7 = inlined_call_operand.hbm [shape: f32[1024,128], index: 7, kind: output, shape index: {}]  }
   0x1   :  { %14 = vsyncpa [#allocation3 + $0x1], 0  ;;  %s1932_s24 = smov 0   ;;  %s1934_s25 = smov 0  }
   0x2   :  { %s1936_s26 = smov 0   ;;  %s1938_s27 = smov 0  }
   0x3 LB: > { %s1953_s28 = sadd.s32 4294967295, %s1886_s27   ;;  %s1475_s29 = sadd.s32 4294967294, %s1886_s27   ;;  %s1886_s27 = sphi %s1938_s27, %s2382_s27   ;;  %s1882_s26 = sphi %s1936_s26, %s2381_s26   ;;  %s1878_s25 = sphi %s1934_s25, %s2380_s25   ;;  %s1874_s24 = sphi %s1932_s24, %s2379_s24  }
   0x4   : > { %s1957_s30 = sadd.s32 1, %s1886_s27   ;;  %s179_s8 = sadd.s32 1, %s1882_s26 }
   0x5   : > { %s176_s9 = ssub.s32 %s1886_s27, %s1957_s30  ;;  %p189_p0 = scmp.ne.s32.totalorder %s1882_s26, %s1878_s25 }
   0x6   : > { %p177_p1 = scmp.eq.s32.totalorder %s176_s9, 0  ;;  %p190_p2 = scmp.eq.s32.totalorder %s1953_s28, 3 }
   0x7   : > { %p195_p3 = scmp.ne.s32.totalorder %s1878_s25, %s1874_s24  ;;  %p196_p4 = scmp.eq.s32.totalorder %s1475_s29, 3 }
   0x8   : > { %s1968_s10 = scalar_select %p177_p1, %s1882_s26, %s179_s8  }
   0x9   : > { %p1970_p5 = por %p190_p2, %p189_p0  ;;  %p1974_p6 = por %p196_p4, %p195_p3 }
   0xa   : > { %p1478_p7 = scmp.ge.s32.totalorder %s1886_s27, 1  ;;  %p241_p8 = scmp.lt.s32.totalorder %s1886_s27, 5 }
   0xc   : > { %p242_p9 = pnand %p1478_p7, %p241_p8 }
   0xd   : > { %s1480_s15 = sshll.u32 (!%p242_p9), %s1953_s28, 5  ;;  %s270_s21 = sand.u32 (!%p242_p9), 1, %s1878_s25  }
   0xe   : > { %245 = sbr.rel (%p242_p9) target bundleno = 776 (0x308), region = 48  ;;  %p274_p10 = scmp.lt.s32.totalorder (!%p242_p9), %s1480_s15, 127 }
   0xf   : > { %s1479_s22 = sshll.u32 (!%p242_p9), %s270_s21, 8  ;;  %s1555_s9 = sshll.u32 (!%p242_p9), %s1953_s28, 12 }
  0x10   : > { %s2253_s8 = scalar_lea.vmem (!%p242_p9), [#allocation2], %s1479_s22  ;;  %s2321_s16 = scalar_lea.hbm (!%p242_p9), %s2376_s7, %s1555_s9 }
  0x11   : > { %s1413_s13 = sshll.u32 (!%p242_p9), %s2253_s8, 4  ;;  %s2329_s17 = scalar_lea.sflag (!%p242_p9), [#allocation3], %s270_s21  ;;  %s2323_s13 = int_to_ptr.vmem [resolvable:$true] %s1413_s13 }
  0x12   : > { %s1826_s28 = scalar_lea.vmem (!%p242_p9), %s2323_s13, 4096  ;;  %s1889_s18 = smov (!%p242_p9), [#allocation2]  }
  0x13   : > { %v1768_v0 = vld [vmem:[%s2370_s1 + $0x8] sm:$0xff]   ;;  %v1769_v1 = vld [vmem:[%s2370_s1] sm:$0xff]   ;;  %s2384_s15 = smov (!%p274_p10, %s1480_s15), 127  ;;  %v1788_v2 = vld [vmem:[%s2372_s3 + $0x74] ss:$8 sps:$4 sm:$0xff]   ;;  %vm416_vm0 = vcmask 261120   ;;  %p1827_p11 = scmp.ne.s32.totalorder %s2323_s13, %s1826_s28 }
  0x14   : > { %1686 = vmatprep.subr.bf16.mxu0 %v1768_v0  ;;  %1722 = vmatprep.subr.bf16.mxu1 %v1768_v0  ;;  %s1481_s20 = sshll.u32 %s2384_s15, 2  ;;  %v1786_v8 = vld [vmem:[%s2372_s3 + $0x70] ss:$8 sps:$4 sm:$0xff]   ;;  %v1791_v10 = vld [vmem:[%s2372_s3 + $0x64] ss:$8 sps:$4 sm:$0xff]   ;;  %v1888_v34 = vmov 0  }
  0x15   : > { %1687 = vmatpush3.bf16.msra.mxu0 %v1768_v0  ;;  %1724 = vmatpush3.bf16.msra.mxu1 %v1768_v0  ;;  %s1993_s23 = scalar_lea.vmem %s2369_s0, %s1481_s20  ;;  %v1789_v13 = vld [vmem:[%s2372_s3 + $0x60] ss:$8 sps:$4 sm:$0xff]   ;;  %v1794_v14 = vld [vmem:[%s2372_s3 + $0x54] ss:$8 sps:$4 sm:$0xff]   ;;  %v1792_v19 = vld [vmem:[%s2372_s3 + $0x50] ss:$8 sps:$4 sm:$0xff]   ;;  %p1828_p12 = pnand %p1827_p11, %p1970_p5 }
  0x16   : > { %1688 = vmatprep.subr.bf16.mxu0 %v1769_v1  ;;  %1723 = vmatprep.subr.bf16.mxu1 %v1769_v1  ;;  %v1770_v3 = vld [vmem:[%s1993_s23] sm:$0xff]   ;;  %v1771_v4 = vld [vmem:[%s1993_s23 + $0x8] sm:$0xff]   ;;  %v1772_v5 = vld [vmem:[%s1993_s23 + $0x10] sm:$0xff]   ;;  %s1830_s19 = sshll.u32 %s1889_s18, 4  ;;  %s1831_s19 = int_to_ptr.vmem [resolvable:$false] %s1830_s19 }
  0x17   : > { %1690 = vmatprep.mubr.msk.bf16.mxu0 %vm416_vm0, %v1770_v3  ;;  %v1773_v6 = vld [vmem:[%s1993_s23 + $0x18] sm:$0xff]   ;;  %v1774_v7 = vld [vmem:[%s1993_s23 + $0x20] sm:$0xff]   ;;  %v1779_v11 = vld [vmem:[%s1993_s23 + $0x48] sm:$0xff]   ;;  %p1829_p13 = pneg %p1828_p12  ;;  %s1832_s20 = scalar_lea.vmem %s1831_s19, 8192 }
  0x18   : > { %v1778_v9 = vld [vmem:[%s1993_s23 + $0x40] sm:$0xff]   ;;  %v1780_v12 = vld [vmem:[%s1993_s23 + $0x50] sm:$0xff]   ;;  %v1775_v15 = vld [vmem:[%s1993_s23 + $0x28] sm:$0xff]   ;;  %p1833_p0 = scmp.lt.s32.totalorder %s2323_s13, %s1831_s19  ;;  %p1834_p1 = scmp.lt.s32.totalorder %s1832_s20, %s1826_s28 }
  0x19   : > { %1689 = vmatpush3.bf16.msra.mxu0 %v1769_v1  ;;  %1725 = vmatpush3.bf16.msra.mxu1 %v1769_v1  ;;  %v1776_v16 = vld [vmem:[%s1993_s23 + $0x30] sm:$0xff]   ;;  %v1781_v17 = vld [vmem:[%s1993_s23 + $0x58] sm:$0xff]   ;;  %v1782_v18 = vld [vmem:[%s1993_s23 + $0x60] sm:$0xff]  }
  0x1a   : > { %782 = vmatprep.subr.bf16.mxu1 %v1788_v2  ;;  %1706 = vmatprep.mubr.msk.bf16.mxu1 %vm416_vm0, %v1778_v9  ;;  %v1797_v20 = vld [vmem:[%s2372_s3 + $0x44] ss:$8 sps:$4 sm:$0xff]   ;;  %v1795_v21 = vld [vmem:[%s2372_s3 + $0x40] ss:$8 sps:$4 sm:$0xff]   ;;  %v1800_v22 = vld [vmem:[%s2372_s3 + $0x34] ss:$8 sps:$4 sm:$0xff]   ;;  %p1835_p2 = por %p1834_p1, %p1833_p0 }
  0x1b   : > { %v1777_v23 = vld [vmem:[%s1993_s23 + $0x38] sm:$0xff]   ;;  %v1783_v24 = vld [vmem:[%s1993_s23 + $0x68] sm:$0xff]   ;;  %v1784_v25 = vld [vmem:[%s1993_s23 + $0x70] sm:$0xff]  }
  0x1c   : > { %1691 = vmatmul.mubr.msk.bf16.vlgmr.msra.gmra.mxu0 %vm416_vm0, %v1771_v4  ;;  %1707 = vmatmul.mubr.msk.bf16.vlgmr.msra.gmra.mxu1 %vm416_vm0, %v1779_v11  ;;  %v1798_v26 = vld [vmem:[%s2372_s3 + $0x30] ss:$8 sps:$4 sm:$0xff]   ;;  %v1803_v28 = vld [vmem:[%s2372_s3 + $0x24] ss:$8 sps:$4 sm:$0xff]   ;;  %v1801_v29 = vld [vmem:[%s2372_s3 + $0x20] ss:$8 sps:$4 sm:$0xff]   ;;  %p1836_p3 = pnand %p1835_p2, %p1829_p13 }
  0x1d   : > { %1694 = vmatprep.mubr.msk.bf16.mxu0 %vm416_vm0, %v1772_v5  ;;  %1710 = vmatprep.mubr.msk.bf16.mxu1 %vm416_vm0, %v1780_v12  ;;  %v1785_v27 = vld [vmem:[%s1993_s23 + $0x78] sm:$0xff]   ;;  %v1809_v32 = vld [vmem:[%s2372_s3 + $0x4] ss:$8 sps:$4 sm:$0xff]   ;;  %v1807_v33 = vld [vmem:[%s2372_s3] ss:$8 sps:$4 sm:$0xff]  }
  0x1e   : > { %783 = vmatpush1.bf16.msra.mxu1 %v1786_v8  ;;  %v1806_v30 = vld [vmem:[%s2372_s3 + $0x14] ss:$8 sps:$4 sm:$0xff]   ;;  %v1804_v31 = vld [vmem:[%s2372_s3 + $0x10] ss:$8 sps:$4 sm:$0xff]   ;;  %v2076_v37 = vld [vmem:[%s2371_s2] ss:$0 sm:$0xff] }
  0x1f   : > { %784 = vmatprep.subr.bf16.mxu1 %v1791_v10  ;;  %v1810_v40 = vld [vmem:[%s2374_s5 + $0x78] sm:$0xff]   ;;  %v1812_v42 = vld [vmem:[%s2374_s5 + $0x70] sm:$0xff]   ;;  %v1814_v49 = vld [vmem:[%s2374_s5 + $0x68] sm:$0xff]  }
  0x20   : > { %v1811_v41 = vld [vmem:[%s2374_s5 + $0x38] sm:$0xff]   ;;  %1574 = vmatprep.subr.bf16.mxu0 %v1810_v40  ;;  %v1813_v46 = vld [vmem:[%s2374_s5 + $0x30] sm:$0xff]   ;;  %v1815_v54 = vld [vmem:[%s2374_s5 + $0x28] sm:$0xff]  }
  0x21   : > { %1575 = vmatpush3.bf16.msra.mxu0 %v1811_v41  ;;  %v1816_v56 = vld [vmem:[%s2374_s5 + $0x60] sm:$0xff]   ;;  %v1818_v61 = vld [vmem:[%s2374_s5 + $0x58] sm:$0xff]  }
  0x22   : > { %785 = vmatpush1.bf16.msra.mxu1 %v1789_v13  ;;  %1576 = vmatprep.subr.bf16.mxu0 %v1812_v42  ;;  %v1817_v59 = vld [vmem:[%s2374_s5 + $0x20] sm:$0xff]   ;;  %v1819_v2 = vld [vmem:[%s2374_s5 + $0x18] sm:$0xff]  }
  0x23   : > { %786 = vmatprep.subr.bf16.mxu1 %v1794_v14 }
  0x24   : > { %1695 = vmatmul.mubr.msk.bf16.gmra.mxu0 %vm416_vm0, %v1773_v6  ;;  %1711 = vmatmul.mubr.msk.bf16.gmra.mxu1 %vm416_vm0, %v1781_v17 }
  0x25   : > { %1698 = vmatprep.mubr.msk.bf16.mxu0 %vm416_vm0, %v1774_v7  ;;  %1714 = vmatprep.mubr.msk.bf16.mxu1 %vm416_vm0, %v1782_v18 }
  0x26   : > { %787 = vmatpush1.bf16.msra.mxu1 %v1792_v19  ;;  %1577 = vmatpush3.bf16.msra.mxu0 %v1813_v46 }
  0x27   : > { %788 = vmatprep.subr.bf16.mxu1 %v1797_v20  ;;  %1578 = vmatprep.subr.bf16.mxu0 %v1814_v49 }
  0x2a   : > { %789 = vmatpush1.bf16.msra.mxu1 %v1795_v21  ;;  %1579 = vmatpush3.bf16.msra.mxu0 %v1815_v54  ;;  %v1820_v54 = vld [vmem:[%s2374_s5 + $0x50] sm:$0xff]  }
  0x2b   : > { %790 = vmatprep.subr.bf16.mxu1 %v1800_v22  ;;  %1580 = vmatprep.subr.bf16.mxu0 %v1816_v56 }
  0x2c   : > { %1699 = vmatmul.mubr.msk.bf16.gmra.mxu0 %vm416_vm0, %v1775_v15  ;;  %1715 = vmatmul.mubr.msk.bf16.gmra.mxu1 %vm416_vm0, %v1783_v24 }
  0x2d   : > { %1702 = vmatprep.mubr.msk.bf16.mxu0 %vm416_vm0, %v1776_v16  ;;  %1718 = vmatprep.mubr.msk.bf16.mxu1 %vm416_vm0, %v1784_v25 }
  0x2e   : > { %791 = vmatpush1.bf16.msra.mxu1 %v1798_v26  ;;  %1581 = vmatpush3.bf16.msra.mxu0 %v1817_v59  ;;  %v1822_v59 = vld [vmem:[%s2374_s5 + $0x48] sm:$0xff]  }
  0x2f   : > { %792 = vmatprep.subr.bf16.mxu1 %v1803_v28  ;;  %1582 = vmatprep.subr.bf16.mxu0 %v1818_v61 }
  0x32   : > { %793 = vmatpush1.bf16.msra.mxu1 %v1801_v29  ;;  %1583 = vmatpush3.bf16.msra.mxu0 %v1819_v2  ;;  %v1825_v2 = vld [vmem:[%s2374_s5] sm:$0xff]  }
  0x33   : > { %794 = vmatprep.subr.bf16.mxu1 %v1806_v30  ;;  %1584 = vmatprep.subr.bf16.mxu0 %v1820_v54 }
  0x34   : > { %1703 = vmatmul.mubr.msk.bf16.gmra.mxu0 %vm416_vm0, %v1777_v23  ;;  %1719 = vmatmul.mubr.msk.bf16.gmra.mxu1 %vm416_vm0, %v1785_v27 }
  0x35   : > { %814 = vmatprep.mubr.bf16.mxu1 %v1888_v34 }
  0x36   : > { %795 = vmatpush1.bf16.msra.mxu1 %v1804_v31 }
  0x37   : > { %796 = vmatprep.subr.bf16.mxu1 %v1809_v32 }
  0x3a   : > { %797 = vmatpush1.bf16.msra.mxu1 %v1807_v33 }
  0xdc   : > { %v1692_v35 = vpop.f32.mrf.mxu0  ;;  %v1708_v30 = vpop.f32.mrf.mxu1 }
  0xdd   : > { %v508_v55 = vadd.f32 %v1692_v35, %v2076_v37 }
  0xde   : > { %v499_v36 = vpop.f32.mrf.mxu0  ;;  %v563_v33 = vpop.f32.mrf.mxu1 }
  0xdf   : > { %v500_v39 = vadd.f32 %v2076_v37, %v499_v36  ;;  %v628_v60 = vmax.f32 %v508_v55, 0.0  ;;  %v1821_v55 = vld [vmem:[%s2374_s5 + $0x10] sm:$0xff]  }
  0xe0   : > { %v1693_v38 = vpop.f32.mrf.mxu0  ;;  %1585 = vmatpush3.bf16.msra.mxu0 %v1821_v55 }
  0xe1   : > { %v626_v47 = vmax.f32 %v500_v39, 0.0  ;;  %v511_v51 = vadd.f32 %v1693_v38, %v2076_v37  ;;  %v1709_v39 = vpop.f32.mrf.mxu1  ;;  %1586 = vmatprep.subr.bf16.mxu0 %v1822_v59 }
  0xe2   : > { %v502_v43 = vpop.f32.mrf.mxu0 }
  0xe3   : > { %v503_v44 = vadd.f32 %v2076_v37, %v502_v43  ;;  %v629_v57 = vmax.f32 %v511_v51, 0.0  ;;  %v566_v42 = vpop.f32.mrf.mxu1  ;;  %v575_v51 = vadd.f32 %v1709_v39, %v2076_v37 }
  0xe4   : > { %v1696_v45 = vpop.f32.mrf.mxu0 }
  0xe5   : > { %v627_v48 = vmax.f32 %v503_v44, 0.0  ;;  %v659_v62 = vpack.c.bf16 %v629_v57, %v628_v60  ;;  %v524_v6 = vadd.f32 %v1696_v45, %v2076_v37  ;;  %v564_v44 = vadd.f32 %v2076_v37, %v563_v33  ;;  %v1712_v46 = vpop.f32.mrf.mxu1  ;;  %v1823_v60 = vld [vmem:[%s2374_s5 + $0x8] sm:$0xff]  }
  0xe6   : > { %v515_v50 = vpop.f32.mrf.mxu0  ;;  %v567_v45 = vadd.f32 %v2076_v37, %v566_v42  ;;  %v645_v57 = vmax.f32 %v575_v51, 0.0  ;;  %1587 = vmatpush3.bf16.msra.mxu0 %v1823_v60 }
  0xe7   : > { %v658_v52 = vpack.c.bf16 %v627_v48, %v626_v47  ;;  %v516_v63 = vadd.f32 %v2076_v37, %v515_v50  ;;  %v632_v10 = vmax.f32 %v524_v6, 0.0  ;;  %v642_v47 = vmax.f32 %v564_v44, 0.0  ;;  %v579_v49 = vpop.f32.mrf.mxu1  ;;  %v690_v44 = vld [vmem:[%s2373_s4] sm:$0x3] }
  0xe8   : > { %v1697_v53 = vpop.f32.mrf.mxu0  ;;  %v643_v48 = vmax.f32 %v567_v45, 0.0  ;;  %v572_v50 = vadd.f32 %v1708_v30, %v2076_v37  ;;  %v588_v6 = vadd.f32 %v1712_v46, %v2076_v37 }
  0xe9   : > { %815 = vmatmul.mubr.bf16.vlgmr.msra.gmra.mxu1 %v658_v52  ;;  %v630_v3 = vmax.f32 %v516_v63, 0.0  ;;  %v527_v7 = vadd.f32 %v1697_v53, %v2076_v37  ;;  %v1713_v53 = vpop.f32.mrf.mxu1 }
  0xea   : > { %824 = vmatprep.mubr.bf16.mxu1 %v1888_v34  ;;  %v518_v58 = vpop.f32.mrf.mxu0  ;;  %v666_v52 = vpack.c.bf16 %v643_v48, %v642_v47  ;;  %v644_v56 = vmax.f32 %v572_v50, 0.0 }
  0xeb   : > { %v519_v0 = vadd.f32 %v2076_v37, %v518_v58  ;;  %v633_v11 = vmax.f32 %v527_v7, 0.0  ;;  %v582_v58 = vpop.f32.mrf.mxu1  ;;  %v591_v7 = vadd.f32 %v1713_v53, %v2076_v37 }
  0xec   : > { %v1700_v1 = vpop.f32.mrf.mxu0  ;;  %v667_v61 = vpack.c.bf16 %v645_v57, %v644_v56  ;;  %v583_v63 = vadd.f32 %v2076_v37, %v582_v58 }
  0xed   : > { %v631_v4 = vmax.f32 %v519_v0, 0.0  ;;  %v661_v13 = vpack.c.bf16 %v633_v11, %v632_v10  ;;  %v540_v20 = vadd.f32 %v1700_v1, %v2076_v37  ;;  %v1716_v0 = vpop.f32.mrf.mxu1  ;;  %v1824_v1 = vld [vmem:[%s2374_s5 + $0x40] sm:$0xff]   ;;  %v648_v10 = vmax.f32 %v588_v6, 0.0 }
  0xee   : > { %v531_v5 = vpop.f32.mrf.mxu0  ;;  %1588 = vmatprep.subr.bf16.mxu0 %v1824_v1  ;;  %v649_v11 = vmax.f32 %v591_v7, 0.0 }
  0xef   : > { %v660_v8 = vpack.c.bf16 %v631_v4, %v630_v3  ;;  %v532_v14 = vadd.f32 %v2076_v37, %v531_v5  ;;  %v636_v24 = vmax.f32 %v540_v20, 0.0  ;;  %v647_v4 = vmax.f32 %v583_v63, 0.0  ;;  %v595_v5 = vpop.f32.mrf.mxu1  ;;  %1589 = vmatpush3.bf16.msra.mxu0 %v1825_v2 }
  0xf0   : > { %v1701_v9 = vpop.f32.mrf.mxu0  ;;  %v604_v20 = vadd.f32 %v1716_v0, %v2076_v37 }
  0xf1   : > { %825 = vmatmul.mubr.bf16.gmra.mxu1 %v659_v62  ;;  %v634_v17 = vmax.f32 %v532_v14, 0.0  ;;  %v543_v21 = vadd.f32 %v1701_v9, %v2076_v37  ;;  %v580_v62 = vadd.f32 %v2076_v37, %v579_v49  ;;  %v1717_v9 = vpop.f32.mrf.mxu1  ;;  %v596_v14 = vadd.f32 %v2076_v37, %v595_v5 }
  0xf2   : > { %834 = vmatprep.mubr.bf16.mxu1 %v1888_v34  ;;  %v534_v12 = vpop.f32.mrf.mxu0 }
  0xf3   : > { %v535_v15 = vadd.f32 %v2076_v37, %v534_v12  ;;  %v637_v25 = vmax.f32 %v543_v21, 0.0  ;;  %v646_v3 = vmax.f32 %v580_v62, 0.0  ;;  %v598_v12 = vpop.f32.mrf.mxu1  ;;  %v607_v21 = vadd.f32 %v1717_v9, %v2076_v37 }
  0xf4   : > { %v1704_v16 = vpop.f32.mrf.mxu0 }
  0xf5   : > { %v635_v18 = vmax.f32 %v535_v15, 0.0  ;;  %v663_v27 = vpack.c.bf16 %v637_v25, %v636_v24  ;;  %v556_v35 = vadd.f32 %v1704_v16, %v2076_v37  ;;  %v599_v15 = vadd.f32 %v2076_v37, %v598_v12  ;;  %v1720_v16 = vpop.f32.mrf.mxu1 }
  0xf6   : > { %v547_v19 = vpop.f32.mrf.mxu0  ;;  %v652_v24 = vmax.f32 %v604_v20, 0.0  ;;  %v653_v25 = vmax.f32 %v607_v21, 0.0 }
  0xf7   : > { %v662_v22 = vpack.c.bf16 %v635_v18, %v634_v17  ;;  %v548_v28 = vadd.f32 %v2076_v37, %v547_v19  ;;  %v640_v40 = vmax.f32 %v556_v35, 0.0  ;;  %v650_v17 = vmax.f32 %v596_v14, 0.0  ;;  %v611_v19 = vpop.f32.mrf.mxu1 }
  0xf8   : > { %v1705_v23 = vpop.f32.mrf.mxu0  ;;  %v651_v18 = vmax.f32 %v599_v15, 0.0 }
  0xf9   : > { %835 = vmatmul.mubr.bf16.gmra.mxu1 %v660_v8  ;;  %v638_v31 = vmax.f32 %v548_v28, 0.0  ;;  %v559_v36 = vadd.f32 %v1705_v23, %v2076_v37  ;;  %v668_v8 = vpack.c.bf16 %v647_v4, %v646_v3  ;;  %v1721_v23 = vpop.f32.mrf.mxu1  ;;  %v612_v28 = vadd.f32 %v2076_v37, %v611_v19 }
  0xfa   : > { %844 = vmatprep.mubr.bf16.mxu1 %v1888_v34  ;;  %v550_v26 = vpop.f32.mrf.mxu0  ;;  %v623_v33 = vadd.f32 %v1721_v23, %v2076_v37 }
  0xfb   : > { %v551_v29 = vadd.f32 %v2076_v37, %v550_v26  ;;  %v641_v41 = vmax.f32 %v559_v36, 0.0  ;;  %v614_v26 = vpop.f32.mrf.mxu1  ;;  %v654_v30 = vmax.f32 %v612_v28, 0.0 }
  0xfd   : > { %v639_v32 = vmax.f32 %v551_v29, 0.0  ;;  %v665_v43 = vpack.c.bf16 %v641_v41, %v640_v40  ;;  %v615_v29 = vadd.f32 %v2076_v37, %v614_v26  ;;  %v692_v40 = vlaneseq }
  0xff   : > { %v664_v38 = vpack.c.bf16 %v639_v32, %v638_v31  ;;  %v655_v31 = vmax.f32 %v615_v29, 0.0  ;;  %v620_v32 = vadd.f32 %v1720_v16, %v2076_v37  ;;  %v693_v41 = vshrl.u32 %v692_v40, 7 }
 0x101   : > { %845 = vmatmul.mubr.bf16.gmra.mxu1 %v661_v13  ;;  %v669_v13 = vpack.c.bf16 %v649_v11, %v648_v10  ;;  %v672_v35 = vpack.c.bf16 %v655_v31, %v654_v30  ;;  %v656_v36 = vmax.f32 %v620_v32, 0.0  ;;  %v698_v42 = vsub.s32 1, %v693_v41 }
 0x102   : > { %854 = vmatprep.mubr.bf16.mxu1 %v1888_v34 }
 0x103   : > { %v2176_v46 = vrot.slane %v690_v44, %v698_v42 }
 0x109   : > { %855 = vmatmul.mubr.bf16.gmra.mxu1 %v662_v22  ;;  %v670_v22 = vpack.c.bf16 %v651_v18, %v650_v17 }
 0x10a   : > { %864 = vmatprep.mubr.bf16.mxu1 %v1888_v34 }
 0x111   : > { %865 = vmatmul.mubr.bf16.gmra.mxu1 %v663_v27  ;;  %v671_v27 = vpack.c.bf16 %v653_v25, %v652_v24 }
 0x112   : > { %874 = vmatprep.mubr.bf16.mxu1 %v1888_v34 }
 0x119   : > { %875 = vmatmul.mubr.bf16.gmra.mxu1 %v664_v38  ;;  %v657_v38 = vmax.f32 %v623_v33, 0.0 }
 0x11a   : > { %884 = vmatprep.mubr.bf16.mxu1 %v1888_v34 }
 0x11b   : > { %v673_v39 = vpack.c.bf16 %v657_v38, %v656_v36 }
 0x121   : > { %885 = vmatmul.mubr.bf16.gmra.mxu1 %v665_v43  ;;  %v694_v43 = vsub.s32 0, %v693_v41 }
 0x122   : > { %894 = vmatprep.mubr.bf16.mxu1 %v1888_v34 }
 0x123   : > { %v2178_v37 = vrot.slane %v690_v44, %v694_v43 }
 0x129   : > { %895 = vmatmul.mubr.bf16.gmra.mxu1 %v666_v52 }
 0x12a   : > { %904 = vmatprep.mubr.bf16.mxu1 %v1888_v34 }
 0x131   : > { %905 = vmatmul.mubr.bf16.gmra.mxu1 %v667_v61 }
 0x132   : > { %914 = vmatprep.mubr.bf16.mxu1 %v1888_v34 }
 0x139   : > { %915 = vmatmul.mubr.bf16.gmra.mxu1 %v668_v8 }
 0x13a   : > { %924 = vmatprep.mubr.bf16.mxu1 %v1888_v34 }
 0x141   : > { %925 = vmatmul.mubr.bf16.gmra.mxu1 %v669_v13 }
 0x142   : > { %934 = vmatprep.mubr.bf16.mxu1 %v1888_v34 }
 0x149   : > { %935 = vmatmul.mubr.bf16.gmra.mxu1 %v670_v22 }
 0x14a   : > { %944 = vmatprep.mubr.bf16.mxu1 %v1888_v34 }
 0x151   : > { %945 = vmatmul.mubr.bf16.gmra.mxu1 %v671_v27 }
 0x152   : > { %954 = vmatprep.mubr.bf16.mxu1 %v1888_v34 }
 0x159   : > { %955 = vmatmul.mubr.bf16.gmra.mxu1 %v672_v35 }
 0x15a   : > { %964 = vmatprep.mubr.bf16.mxu1 %v1888_v34 }
 0x161   : > { %965 = vmatmul.mubr.bf16.gmra.mxu1 %v673_v39 }
 0x1a9   : > { %v816_v45 = vpop.f32.mrf.mxu1 }
 0x1aa   : > { %v817_v50 = vadd.f32 %v816_v45, %v2178_v37 }
 0x1ab   : > { %v818_v47 = vpop.f32.mrf.mxu1 }
 0x1ac   : > { %v819_v34 = vadd.f32 %v818_v47, %v2176_v46  ;;  %v975_v57 = vmax.f32 %v817_v50, 0.0 }
 0x1ad   : > { %v820_v48 = vpop.f32.mrf.mxu1 }
 0x1ae   : > { %v821_v49 = vadd.f32 %v820_v48, %v2178_v37  ;;  %v976_v55 = vmax.f32 %v819_v34, 0.0 }
 0x1af   : > { %v822_v51 = vpop.f32.mrf.mxu1 }
 0x1b0   : > { %v823_v52 = vadd.f32 %v822_v51, %v2176_v46  ;;  %v977_v53 = vmax.f32 %v821_v49, 0.0 }
 0x1b1   : > { %v826_v54 = vpop.f32.mrf.mxu1 }
 0x1b2   : > { %v978_v56 = vmax.f32 %v823_v52, 0.0  ;;  %v1039_v60 = vpack.c.bf16 %v977_v53, %v975_v57  ;;  %v827_v0 = vadd.f32 %v826_v54, %v2178_v37 }
 0x1b3   : > { %v828_v58 = vpop.f32.mrf.mxu1 }
 0x1b4   : > { %v1040_v59 = vpack.c.bf16 %v978_v56, %v976_v55  ;;  %v829_v62 = vadd.f32 %v828_v58, %v2176_v46  ;;  %v979_v7 = vmax.f32 %v827_v0, 0.0 }
 0x1b5   : > { %v830_v61 = vpop.f32.mrf.mxu1 }
 0x1b6   : > { %v831_v63 = vadd.f32 %v830_v61, %v2178_v37  ;;  %1238 = vmatprep.mubr.bf16.mxu0 %v1040_v59  ;;  %v980_v5 = vmax.f32 %v829_v62, 0.0 }
 0x1b7   : > { %v832_v1 = vpop.f32.mrf.mxu1  ;;  %1239 = vmatmul.mubr.bf16.vlgmr.msra.gmra.mxu0 %v1039_v60 }
 0x1b8   : > { %v833_v2 = vadd.f32 %v832_v1, %v2176_v46  ;;  %v981_v3 = vmax.f32 %v831_v63, 0.0 }
 0x1b9   : > { %v836_v4 = vpop.f32.mrf.mxu1 }
 0x1ba   : > { %v982_v6 = vmax.f32 %v833_v2, 0.0  ;;  %v1041_v10 = vpack.c.bf16 %v981_v3, %v979_v7  ;;  %v837_v14 = vadd.f32 %v836_v4, %v2178_v37 }
 0x1bb   : > { %v838_v8 = vpop.f32.mrf.mxu1 }
 0x1bc   : > { %v1042_v9 = vpack.c.bf16 %v982_v6, %v980_v5  ;;  %v839_v12 = vadd.f32 %v838_v8, %v2176_v46  ;;  %v983_v21 = vmax.f32 %v837_v14, 0.0 }
 0x1bd   : > { %v840_v11 = vpop.f32.mrf.mxu1 }
 0x1be   : > { %v841_v13 = vadd.f32 %v840_v11, %v2178_v37  ;;  %1246 = vmatprep.mubr.bf16.mxu0 %v1042_v9  ;;  %v984_v19 = vmax.f32 %v839_v12, 0.0 }
 0x1bf   : > { %v842_v15 = vpop.f32.mrf.mxu1  ;;  %1247 = vmatmul.mubr.bf16.gmra.mxu0 %v1041_v10 }
 0x1c0   : > { %v843_v16 = vadd.f32 %v842_v15, %v2176_v46  ;;  %v985_v17 = vmax.f32 %v841_v13, 0.0 }
 0x1c1   : > { %v846_v18 = vpop.f32.mrf.mxu1 }
 0x1c2   : > { %v986_v20 = vmax.f32 %v843_v16, 0.0  ;;  %v1043_v24 = vpack.c.bf16 %v985_v17, %v983_v21  ;;  %v847_v28 = vadd.f32 %v846_v18, %v2178_v37 }
 0x1c3   : > { %v848_v22 = vpop.f32.mrf.mxu1 }
 0x1c4   : > { %v1044_v23 = vpack.c.bf16 %v986_v20, %v984_v19  ;;  %v849_v26 = vadd.f32 %v848_v22, %v2176_v46  ;;  %v987_v36 = vmax.f32 %v847_v28, 0.0 }
 0x1c5   : > { %v850_v25 = vpop.f32.mrf.mxu1 }
 0x1c6   : > { %v851_v27 = vadd.f32 %v850_v25, %v2178_v37  ;;  %1254 = vmatprep.mubr.bf16.mxu0 %v1044_v23  ;;  %v988_v33 = vmax.f32 %v849_v26, 0.0 }
 0x1c7   : > { %v852_v29 = vpop.f32.mrf.mxu1  ;;  %1255 = vmatmul.mubr.bf16.gmra.mxu0 %v1043_v24 }
 0x1c8   : > { %v853_v30 = vadd.f32 %v852_v29, %v2176_v46  ;;  %v989_v31 = vmax.f32 %v851_v27, 0.0 }
 0x1c9   : > { %v856_v32 = vpop.f32.mrf.mxu1 }
 0x1ca   : > { %v990_v35 = vmax.f32 %v853_v30, 0.0  ;;  %v1045_v40 = vpack.c.bf16 %v989_v31, %v987_v36  ;;  %v857_v44 = vadd.f32 %v856_v32, %v2178_v37 }
 0x1cb   : > { %v858_v38 = vpop.f32.mrf.mxu1 }
 0x1cc   : > { %v1046_v39 = vpack.c.bf16 %v990_v35, %v988_v33  ;;  %v859_v42 = vadd.f32 %v858_v38, %v2176_v46  ;;  %v991_v51 = vmax.f32 %v857_v44, 0.0 }
 0x1cd   : > { %v860_v41 = vpop.f32.mrf.mxu1 }
 0x1ce   : > { %v861_v43 = vadd.f32 %v860_v41, %v2178_v37  ;;  %1262 = vmatprep.mubr.bf16.mxu0 %v1046_v39  ;;  %v992_v49 = vmax.f32 %v859_v42, 0.0 }
 0x1cf   : > { %v862_v45 = vpop.f32.mrf.mxu1  ;;  %1263 = vmatmul.mubr.bf16.gmra.mxu0 %v1045_v40 }
 0x1d0   : > { %v863_v47 = vadd.f32 %v862_v45, %v2176_v46  ;;  %v993_v48 = vmax.f32 %v861_v43, 0.0 }
 0x1d1   : > { %v866_v34 = vpop.f32.mrf.mxu1 }
 0x1d2   : > { %v994_v50 = vmax.f32 %v863_v47, 0.0  ;;  %v1047_v54 = vpack.c.bf16 %v993_v48, %v991_v51  ;;  %v867_v58 = vadd.f32 %v866_v34, %v2178_v37 }
 0x1d3   : > { %v868_v52 = vpop.f32.mrf.mxu1 }
 0x1d4   : > { %v1048_v53 = vpack.c.bf16 %v994_v50, %v992_v49  ;;  %v869_v56 = vadd.f32 %v868_v52, %v2176_v46  ;;  %v995_v1 = vmax.f32 %v867_v58, 0.0 }
 0x1d5   : > { %v870_v55 = vpop.f32.mrf.mxu1 }
 0x1d6   : > { %v871_v57 = vadd.f32 %v870_v55, %v2178_v37  ;;  %1270 = vmatprep.mubr.bf16.mxu0 %v1048_v53  ;;  %v996_v63 = vmax.f32 %v869_v56, 0.0 }
 0x1d7   : > { %v872_v59 = vpop.f32.mrf.mxu1  ;;  %1271 = vmatmul.mubr.bf16.gmra.mxu0 %v1047_v54 }
 0x1d8   : > { %v873_v60 = vadd.f32 %v872_v59, %v2176_v46  ;;  %v997_v61 = vmax.f32 %v871_v57, 0.0 }
 0x1d9   : > { %v876_v62 = vpop.f32.mrf.mxu1 }
 0x1da   : > { %v998_v0 = vmax.f32 %v873_v60, 0.0  ;;  %v1049_v4 = vpack.c.bf16 %v997_v61, %v995_v1  ;;  %v877_v8 = vadd.f32 %v876_v62, %v2178_v37 }
 0x1db   : > { %v878_v2 = vpop.f32.mrf.mxu1 }
 0x1dc   : > { %v1050_v3 = vpack.c.bf16 %v998_v0, %v996_v63  ;;  %v879_v6 = vadd.f32 %v878_v2, %v2176_v46  ;;  %v999_v15 = vmax.f32 %v877_v8, 0.0 }
 0x1dd   : > { %v880_v5 = vpop.f32.mrf.mxu1 }
 0x1de   : > { %v881_v7 = vadd.f32 %v880_v5, %v2178_v37  ;;  %1278 = vmatprep.mubr.bf16.mxu0 %v1050_v3  ;;  %v1000_v13 = vmax.f32 %v879_v6, 0.0 }
 0x1df   : > { %v882_v9 = vpop.f32.mrf.mxu1  ;;  %1279 = vmatmul.mubr.bf16.gmra.mxu0 %v1049_v4 }
 0x1e0   : > { %v883_v10 = vadd.f32 %v882_v9, %v2176_v46  ;;  %v1001_v11 = vmax.f32 %v881_v7, 0.0 }
 0x1e1   : > { %v886_v12 = vpop.f32.mrf.mxu1 }
 0x1e2   : > { %v1002_v14 = vmax.f32 %v883_v10, 0.0  ;;  %v1051_v18 = vpack.c.bf16 %v1001_v11, %v999_v15  ;;  %v887_v22 = vadd.f32 %v886_v12, %v2178_v37 }
 0x1e3   : > { %v888_v16 = vpop.f32.mrf.mxu1 }
 0x1e4   : > { %v1052_v17 = vpack.c.bf16 %v1002_v14, %v1000_v13  ;;  %v889_v20 = vadd.f32 %v888_v16, %v2176_v46  ;;  %v1003_v29 = vmax.f32 %v887_v22, 0.0 }
 0x1e5   : > { %v890_v19 = vpop.f32.mrf.mxu1 }
 0x1e6   : > { %v891_v21 = vadd.f32 %v890_v19, %v2178_v37  ;;  %1286 = vmatprep.mubr.bf16.mxu0 %v1052_v17  ;;  %v1004_v27 = vmax.f32 %v889_v20, 0.0 }
 0x1e7   : > { %v892_v23 = vpop.f32.mrf.mxu1  ;;  %1287 = vmatmul.mubr.bf16.gmra.mxu0 %v1051_v18 }
 0x1e8   : > { %v893_v24 = vadd.f32 %v892_v23, %v2176_v46  ;;  %v1005_v25 = vmax.f32 %v891_v21, 0.0 }
 0x1e9   : > { %v896_v26 = vpop.f32.mrf.mxu1 }
 0x1ea   : > { %v1006_v28 = vmax.f32 %v893_v24, 0.0  ;;  %v1053_v32 = vpack.c.bf16 %v1005_v25, %v1003_v29  ;;  %v897_v38 = vadd.f32 %v896_v26, %v2178_v37 }
 0x1eb   : > { %v898_v30 = vpop.f32.mrf.mxu1 }
 0x1ec   : > { %v1054_v31 = vpack.c.bf16 %v1006_v28, %v1004_v27  ;;  %v899_v35 = vadd.f32 %v898_v30, %v2176_v46  ;;  %v1007_v45 = vmax.f32 %v897_v38, 0.0 }
 0x1ed   : > { %v900_v33 = vpop.f32.mrf.mxu1 }
 0x1ee   : > { %v901_v36 = vadd.f32 %v900_v33, %v2178_v37  ;;  %1294 = vmatprep.mubr.bf16.mxu0 %v1054_v31  ;;  %v1008_v43 = vmax.f32 %v899_v35, 0.0 }
 0x1ef   : > { %v902_v39 = vpop.f32.mrf.mxu1  ;;  %1295 = vmatmul.mubr.bf16.gmra.mxu0 %v1053_v32 }
 0x1f0   : > { %v903_v40 = vadd.f32 %v902_v39, %v2176_v46  ;;  %v1009_v41 = vmax.f32 %v901_v36, 0.0 }
 0x1f1   : > { %v906_v42 = vpop.f32.mrf.mxu1 }
 0x1f2   : > { %v1010_v44 = vmax.f32 %v903_v40, 0.0  ;;  %v1055_v34 = vpack.c.bf16 %v1009_v41, %v1007_v45  ;;  %v907_v52 = vadd.f32 %v906_v42, %v2178_v37 }
 0x1f3   : > { %v908_v47 = vpop.f32.mrf.mxu1 }
 0x1f4   : > { %v1056_v48 = vpack.c.bf16 %v1010_v44, %v1008_v43  ;;  %v909_v50 = vadd.f32 %v908_v47, %v2176_v46  ;;  %v1011_v59 = vmax.f32 %v907_v52, 0.0 }
 0x1f5   : > { %v910_v49 = vpop.f32.mrf.mxu1 }
 0x1f6   : > { %v911_v51 = vadd.f32 %v910_v49, %v2178_v37  ;;  %1302 = vmatprep.mubr.bf16.mxu0 %v1056_v48  ;;  %v1012_v57 = vmax.f32 %v909_v50, 0.0 }
 0x1f7   : > { %v912_v53 = vpop.f32.mrf.mxu1  ;;  %1303 = vmatmul.mubr.bf16.gmra.mxu0 %v1055_v34 }
 0x1f8   : > { %v913_v54 = vadd.f32 %v912_v53, %v2176_v46  ;;  %v1013_v55 = vmax.f32 %v911_v51, 0.0 }
 0x1f9   : > { %v916_v56 = vpop.f32.mrf.mxu1 }
 0x1fa   : > { %v1014_v58 = vmax.f32 %v913_v54, 0.0  ;;  %v1057_v62 = vpack.c.bf16 %v1013_v55, %v1011_v59  ;;  %v917_v2 = vadd.f32 %v916_v56, %v2178_v37 }
 0x1fb   : > { %v918_v60 = vpop.f32.mrf.mxu1 }
 0x1fc   : > { %v1058_v61 = vpack.c.bf16 %v1014_v58, %v1012_v57  ;;  %v919_v0 = vadd.f32 %v918_v60, %v2176_v46  ;;  %v1015_v9 = vmax.f32 %v917_v2, 0.0 }
 0x1fd   : > { %v920_v63 = vpop.f32.mrf.mxu1 }
 0x1fe   : > { %v921_v1 = vadd.f32 %v920_v63, %v2178_v37  ;;  %1310 = vmatprep.mubr.bf16.mxu0 %v1058_v61  ;;  %v1016_v7 = vmax.f32 %v919_v0, 0.0 }
 0x1ff   : > { %v922_v3 = vpop.f32.mrf.mxu1  ;;  %1311 = vmatmul.mubr.bf16.gmra.mxu0 %v1057_v62 }
 0x200   : > { %v923_v4 = vadd.f32 %v922_v3, %v2176_v46  ;;  %v1017_v5 = vmax.f32 %v921_v1, 0.0 }
 0x201   : > { %v926_v6 = vpop.f32.mrf.mxu1 }
 0x202   : > { %v1018_v8 = vmax.f32 %v923_v4, 0.0  ;;  %v1059_v12 = vpack.c.bf16 %v1017_v5, %v1015_v9  ;;  %v927_v16 = vadd.f32 %v926_v6, %v2178_v37 }
 0x203   : > { %v928_v10 = vpop.f32.mrf.mxu1 }
 0x204   : > { %v1060_v11 = vpack.c.bf16 %v1018_v8, %v1016_v7  ;;  %v929_v14 = vadd.f32 %v928_v10, %v2176_v46  ;;  %v1019_v23 = vmax.f32 %v927_v16, 0.0 }
 0x205   : > { %v930_v13 = vpop.f32.mrf.mxu1 }
 0x206   : > { %v931_v15 = vadd.f32 %v930_v13, %v2178_v37  ;;  %1318 = vmatprep.mubr.bf16.mxu0 %v1060_v11  ;;  %v1020_v21 = vmax.f32 %v929_v14, 0.0 }
 0x207   : > { %v932_v17 = vpop.f32.mrf.mxu1  ;;  %1319 = vmatmul.mubr.bf16.gmra.mxu0 %v1059_v12 }
 0x208   : > { %v933_v18 = vadd.f32 %v932_v17, %v2176_v46  ;;  %v1021_v19 = vmax.f32 %v931_v15, 0.0 }
 0x209   : > { %v936_v20 = vpop.f32.mrf.mxu1 }
 0x20a   : > { %v1022_v22 = vmax.f32 %v933_v18, 0.0  ;;  %v1061_v26 = vpack.c.bf16 %v1021_v19, %v1019_v23  ;;  %v937_v30 = vadd.f32 %v936_v20, %v2178_v37 }
 0x20b   : > { %v938_v24 = vpop.f32.mrf.mxu1 }
 0x20c   : > { %v1062_v25 = vpack.c.bf16 %v1022_v22, %v1020_v21  ;;  %v939_v28 = vadd.f32 %v938_v24, %v2176_v46  ;;  %v1023_v39 = vmax.f32 %v937_v30, 0.0 }
 0x20d   : > { %v940_v27 = vpop.f32.mrf.mxu1 }
 0x20e   : > { %v941_v29 = vadd.f32 %v940_v27, %v2178_v37  ;;  %1326 = vmatprep.mubr.bf16.mxu0 %v1062_v25  ;;  %v1024_v36 = vmax.f32 %v939_v28, 0.0 }
 0x20f   : > { %v942_v31 = vpop.f32.mrf.mxu1  ;;  %1327 = vmatmul.mubr.bf16.gmra.mxu0 %v1061_v26 }
 0x210   : > { %v943_v32 = vadd.f32 %v942_v31, %v2176_v46  ;;  %v1025_v33 = vmax.f32 %v941_v29, 0.0 }
 0x211   : > { %v946_v35 = vpop.f32.mrf.mxu1 }
 0x212   : > { %v1026_v38 = vmax.f32 %v943_v32, 0.0  ;;  %v1063_v42 = vpack.c.bf16 %v1025_v33, %v1023_v39  ;;  %v947_v47 = vadd.f32 %v946_v35, %v2178_v37 }
 0x213   : > { %v948_v40 = vpop.f32.mrf.mxu1 }
 0x214   : > { %v1064_v41 = vpack.c.bf16 %v1026_v38, %v1024_v36  ;;  %v949_v44 = vadd.f32 %v948_v40, %v2176_v46  ;;  %v1027_v53 = vmax.f32 %v947_v47, 0.0 }
 0x215   : > { %v950_v43 = vpop.f32.mrf.mxu1 }
 0x216   : > { %v951_v45 = vadd.f32 %v950_v43, %v2178_v37  ;;  %1334 = vmatprep.mubr.bf16.mxu0 %v1064_v41  ;;  %v1028_v51 = vmax.f32 %v949_v44, 0.0 }
 0x217   : > { %v952_v48 = vpop.f32.mrf.mxu1  ;;  %1335 = vmatmul.mubr.bf16.gmra.mxu0 %v1063_v42 }
 0x218   : > { %v953_v34 = vadd.f32 %v952_v48, %v2176_v46  ;;  %v1029_v49 = vmax.f32 %v951_v45, 0.0 }
 0x219   : > { %v956_v50 = vpop.f32.mrf.mxu1 }
 0x21a   : > { %v1030_v52 = vmax.f32 %v953_v34, 0.0  ;;  %v1065_v56 = vpack.c.bf16 %v1029_v49, %v1027_v53  ;;  %v957_v60 = vadd.f32 %v956_v50, %v2178_v37 }
 0x21b   : > { %v958_v54 = vpop.f32.mrf.mxu1 }
 0x21c   : > { %v1066_v55 = vpack.c.bf16 %v1030_v52, %v1028_v51  ;;  %v959_v58 = vadd.f32 %v958_v54, %v2176_v46  ;;  %v1031_v3 = vmax.f32 %v957_v60, 0.0 }
 0x21d   : > { %v960_v57 = vpop.f32.mrf.mxu1 }
 0x21e   : > { %v961_v59 = vadd.f32 %v960_v57, %v2178_v37  ;;  %1342 = vmatprep.mubr.bf16.mxu0 %v1066_v55  ;;  %v1032_v1 = vmax.f32 %v959_v58, 0.0 }
 0x21f   : > { %v962_v61 = vpop.f32.mrf.mxu1  ;;  %1343 = vmatmul.mubr.bf16.gmra.mxu0 %v1065_v56 }
 0x220   : > { %v963_v62 = vadd.f32 %v962_v61, %v2176_v46  ;;  %v1033_v63 = vmax.f32 %v961_v59, 0.0 }
 0x221   : > { %v966_v0 = vpop.f32.mrf.mxu1 }
 0x222   : > { %v1034_v2 = vmax.f32 %v963_v62, 0.0  ;;  %v1067_v6 = vpack.c.bf16 %v1033_v63, %v1031_v3  ;;  %v967_v10 = vadd.f32 %v966_v0, %v2178_v37 }
 0x223   : > { %v968_v4 = vpop.f32.mrf.mxu1 }
 0x224   : > { %v1068_v5 = vpack.c.bf16 %v1034_v2, %v1032_v1  ;;  %v969_v8 = vadd.f32 %v968_v4, %v2176_v46  ;;  %v1035_v16 = vmax.f32 %v967_v10, 0.0 }
 0x225   : > { %v970_v7 = vpop.f32.mrf.mxu1 }
 0x226   : > { %v971_v9 = vadd.f32 %v970_v7, %v2178_v37  ;;  %1350 = vmatprep.mubr.bf16.mxu0 %v1068_v5  ;;  %v1036_v14 = vmax.f32 %v969_v8, 0.0  ;;  %v2250_v37 = vld [vmem:[%s2375_s6] ss:$0 sm:$0xff] }
 0x227   : > { %v972_v11 = vpop.f32.mrf.mxu1  ;;  %1351 = vmatmul.mubr.bf16.gmra.mxu0 %v1067_v6 }
 0x228   : > { %v973_v12 = vadd.f32 %v972_v11, %v2176_v46  ;;  %v1037_v13 = vmax.f32 %v971_v9, 0.0 }
 0x22a   : > { %v1038_v15 = vmax.f32 %v973_v12, 0.0  ;;  %v1069_v18 = vpack.c.bf16 %v1037_v13, %v1035_v16 }
 0x22c   : > { %v1070_v17 = vpack.c.bf16 %v1038_v15, %v1036_v14 }
 0x22e   : > { %1358 = vmatprep.mubr.bf16.mxu0 %v1070_v17 }
 0x22f   : > { %1359 = vmatmul.mubr.bf16.gmra.mxu0 %v1069_v18 }
 0x277   : > { %v1590_v19 = vpop.f32.mrf.mxu0 }
 0x279   : > { %v1591_v20 = vpop.f32.mrf.mxu0 }
 0x27a   : > { %v1592_v21 = vadd.f32 %v1591_v20, %v1590_v19 }
 0x27b   : > { %v1593_v46 = vpop.f32.mrf.mxu0 }
 0x27c   : > { %v1241_v22 = vadd.f32 %v1592_v21, %v2250_v37 }
 0x27d   : > { %v1594_v23 = vpop.f32.mrf.mxu0 }
 0x27e   : > { %1367 = vst [vmem:[%s2253_s8] sm:$0xff] %v1241_v22  ;;  %v1595_v24 = vadd.f32 %v1594_v23, %v1593_v46 }
 0x27f   : > { %v1596_v25 = vpop.f32.mrf.mxu0 }
 0x280   : > { %v1244_v26 = vadd.f32 %v1595_v24, %v2250_v37 }
 0x281   : > { %v1597_v27 = vpop.f32.mrf.mxu0 }
 0x282   : > { %1368 = vst [vmem:[%s2253_s8 + $0x8] sm:$0xff] %v1244_v26  ;;  %v1598_v28 = vadd.f32 %v1597_v27, %v1596_v25 }
 0x283   : > { %v1599_v29 = vpop.f32.mrf.mxu0 }
 0x284   : > { %v1249_v30 = vadd.f32 %v1598_v28, %v2250_v37 }
 0x285   : > { %v1600_v31 = vpop.f32.mrf.mxu0 }
 0x286   : > { %1369 = vst [vmem:[%s2253_s8 + $0x10] sm:$0xff] %v1249_v30  ;;  %v1601_v32 = vadd.f32 %v1600_v31, %v1599_v29 }
 0x287   : > { %v1602_v33 = vpop.f32.mrf.mxu0 }
 0x288   : > { %v1252_v35 = vadd.f32 %v1601_v32, %v2250_v37 }
 0x289   : > { %v1603_v36 = vpop.f32.mrf.mxu0 }
 0x28a   : > { %1370 = vst [vmem:[%s2253_s8 + $0x18] sm:$0xff] %v1252_v35  ;;  %v1604_v38 = vadd.f32 %v1603_v36, %v1602_v33 }
 0x28b   : > { %v1605_v39 = vpop.f32.mrf.mxu0 }
 0x28c   : > { %v1257_v40 = vadd.f32 %v1604_v38, %v2250_v37 }
 0x28d   : > { %v1606_v41 = vpop.f32.mrf.mxu0 }
 0x28e   : > { %1371 = vst [vmem:[%s2253_s8 + $0x20] sm:$0xff] %v1257_v40  ;;  %v1607_v42 = vadd.f32 %v1606_v41, %v1605_v39 }
 0x28f   : > { %v1608_v43 = vpop.f32.mrf.mxu0 }
 0x290   : > { %v1260_v44 = vadd.f32 %v1607_v42, %v2250_v37 }
 0x291   : > { %v1609_v45 = vpop.f32.mrf.mxu0 }
 0x292   : > { %1372 = vst [vmem:[%s2253_s8 + $0x28] sm:$0xff] %v1260_v44  ;;  %v1610_v47 = vadd.f32 %v1609_v45, %v1608_v43 }
 0x293   : > { %v1611_v48 = vpop.f32.mrf.mxu0 }
 0x294   : > { %v1265_v34 = vadd.f32 %v1610_v47, %v2250_v37 }
 0x295   : > { %v1612_v49 = vpop.f32.mrf.mxu0 }
 0x296   : > { %1373 = vst [vmem:[%s2253_s8 + $0x30] sm:$0xff] %v1265_v34  ;;  %v1613_v50 = vadd.f32 %v1612_v49, %v1611_v48 }
 0x297   : > { %v1614_v51 = vpop.f32.mrf.mxu0 }
 0x298   : > { %v1268_v52 = vadd.f32 %v1613_v50, %v2250_v37 }
 0x299   : > { %v1615_v53 = vpop.f32.mrf.mxu0 }
 0x29a   : > { %1374 = vst [vmem:[%s2253_s8 + $0x38] sm:$0xff] %v1268_v52  ;;  %v1616_v54 = vadd.f32 %v1615_v53, %v1614_v51 }
 0x29b   : > { %v1617_v55 = vpop.f32.mrf.mxu0 }
 0x29c   : > { %v1273_v56 = vadd.f32 %v1616_v54, %v2250_v37 }
 0x29d   : > { %v1618_v57 = vpop.f32.mrf.mxu0 }
 0x29e   : > { %1375 = vst [vmem:[%s2253_s8 + $0x40] sm:$0xff] %v1273_v56  ;;  %v1619_v58 = vadd.f32 %v1618_v57, %v1617_v55 }
 0x29f   : > { %v1620_v59 = vpop.f32.mrf.mxu0 }
 0x2a0   : > { %v1276_v60 = vadd.f32 %v1619_v58, %v2250_v37 }
 0x2a1   : > { %v1621_v61 = vpop.f32.mrf.mxu0 }
 0x2a2   : > { %1376 = vst [vmem:[%s2253_s8 + $0x48] sm:$0xff] %v1276_v60  ;;  %v1622_v62 = vadd.f32 %v1621_v61, %v1620_v59 }
 0x2a3   : > { %v1623_v63 = vpop.f32.mrf.mxu0 }
 0x2a4   : > { %v1281_v0 = vadd.f32 %v1622_v62, %v2250_v37 }
 0x2a5   : > { %v1624_v1 = vpop.f32.mrf.mxu0 }
 0x2a6   : > { %1377 = vst [vmem:[%s2253_s8 + $0x50] sm:$0xff] %v1281_v0  ;;  %v1625_v2 = vadd.f32 %v1624_v1, %v1623_v63 }
 0x2a7   : > { %v1626_v3 = vpop.f32.mrf.mxu0 }
 0x2a8   : > { %v1284_v4 = vadd.f32 %v1625_v2, %v2250_v37 }
 0x2a9   : > { %v1627_v5 = vpop.f32.mrf.mxu0 }
 0x2aa   : > { %1378 = vst [vmem:[%s2253_s8 + $0x58] sm:$0xff] %v1284_v4  ;;  %v1628_v6 = vadd.f32 %v1627_v5, %v1626_v3 }
 0x2ab   : > { %v1629_v7 = vpop.f32.mrf.mxu0 }
 0x2ac   : > { %v1289_v8 = vadd.f32 %v1628_v6, %v2250_v37 }
 0x2ad   : > { %v1630_v9 = vpop.f32.mrf.mxu0 }
 0x2ae   : > { %1379 = vst [vmem:[%s2253_s8 + $0x60] sm:$0xff] %v1289_v8  ;;  %v1631_v10 = vadd.f32 %v1630_v9, %v1629_v7 }
 0x2af   : > { %v1632_v11 = vpop.f32.mrf.mxu0 }
 0x2b0   : > { %v1292_v12 = vadd.f32 %v1631_v10, %v2250_v37 }
 0x2b1   : > { %v1633_v13 = vpop.f32.mrf.mxu0 }
 0x2b2   : > { %1380 = vst [vmem:[%s2253_s8 + $0x68] sm:$0xff] %v1292_v12  ;;  %v1634_v14 = vadd.f32 %v1633_v13, %v1632_v11 }
 0x2b3   : > { %v1635_v15 = vpop.f32.mrf.mxu0 }
 0x2b4   : > { %v1297_v16 = vadd.f32 %v1634_v14, %v2250_v37 }
 0x2b5   : > { %v1636_v17 = vpop.f32.mrf.mxu0 }
 0x2b6   : > { %1381 = vst [vmem:[%s2253_s8 + $0x70] sm:$0xff] %v1297_v16  ;;  %v1637_v18 = vadd.f32 %v1636_v17, %v1635_v15 }
 0x2b7   : > { %v1638_v19 = vpop.f32.mrf.mxu0 }
 0x2b8   : > { %v1300_v20 = vadd.f32 %v1637_v18, %v2250_v37 }
 0x2b9   : > { %v1639_v21 = vpop.f32.mrf.mxu0 }
 0x2ba   : > { %1382 = vst [vmem:[%s2253_s8 + $0x78] sm:$0xff] %v1300_v20  ;;  %v1640_v46 = vadd.f32 %v1639_v21, %v1638_v19 }
 0x2bb   : > { %v1641_v22 = vpop.f32.mrf.mxu0 }
 0x2bc   : > { %v1305_v23 = vadd.f32 %v1640_v46, %v2250_v37 }
 0x2bd   : > { %v1642_v24 = vpop.f32.mrf.mxu0 }
 0x2be   : > { %1383 = vst [vmem:[%s2253_s8 + $0x80] sm:$0xff] %v1305_v23  ;;  %v1643_v25 = vadd.f32 %v1642_v24, %v1641_v22 }
 0x2bf   : > { %v1644_v26 = vpop.f32.mrf.mxu0 }
 0x2c0   : > { %v1308_v27 = vadd.f32 %v1643_v25, %v2250_v37 }
 0x2c1   : > { %v1645_v28 = vpop.f32.mrf.mxu0 }
 0x2c2   : > { %1384 = vst [vmem:[%s2253_s8 + $0x88] sm:$0xff] %v1308_v27  ;;  %v1646_v29 = vadd.f32 %v1645_v28, %v1644_v26 }
 0x2c3   : > { %v1647_v30 = vpop.f32.mrf.mxu0 }
 0x2c4   : > { %v1313_v31 = vadd.f32 %v1646_v29, %v2250_v37 }
 0x2c5   : > { %v1648_v32 = vpop.f32.mrf.mxu0 }
 0x2c6   : > { %1385 = vst [vmem:[%s2253_s8 + $0x90] sm:$0xff] %v1313_v31  ;;  %v1649_v33 = vadd.f32 %v1648_v32, %v1647_v30 }
 0x2c7   : > { %v1650_v35 = vpop.f32.mrf.mxu0 }
 0x2c8   : > { %v1316_v36 = vadd.f32 %v1649_v33, %v2250_v37 }
 0x2c9   : > { %v1651_v38 = vpop.f32.mrf.mxu0 }
 0x2ca   : > { %1386 = vst [vmem:[%s2253_s8 + $0x98] sm:$0xff] %v1316_v36  ;;  %v1652_v39 = vadd.f32 %v1651_v38, %v1650_v35 }
 0x2cb   : > { %v1653_v40 = vpop.f32.mrf.mxu0 }
 0x2cc   : > { %v1321_v41 = vadd.f32 %v1652_v39, %v2250_v37 }
 0x2cd   : > { %v1654_v42 = vpop.f32.mrf.mxu0 }
 0x2ce   : > { %1387 = vst [vmem:[%s2253_s8 + $0xa0] sm:$0xff] %v1321_v41  ;;  %v1655_v43 = vadd.f32 %v1654_v42, %v1653_v40 }
 0x2cf   : > { %v1656_v44 = vpop.f32.mrf.mxu0 }
 0x2d0   : > { %v1324_v45 = vadd.f32 %v1655_v43, %v2250_v37 }
 0x2d1   : > { %v1657_v47 = vpop.f32.mrf.mxu0 }
 0x2d2   : > { %1388 = vst [vmem:[%s2253_s8 + $0xa8] sm:$0xff] %v1324_v45  ;;  %v1658_v48 = vadd.f32 %v1657_v47, %v1656_v44 }
 0x2d3   : > { %v1659_v34 = vpop.f32.mrf.mxu0 }
 0x2d4   : > { %v1329_v49 = vadd.f32 %v1658_v48, %v2250_v37 }
 0x2d5   : > { %v1660_v50 = vpop.f32.mrf.mxu0 }
 0x2d6   : > { %1389 = vst [vmem:[%s2253_s8 + $0xb0] sm:$0xff] %v1329_v49  ;;  %v1661_v51 = vadd.f32 %v1660_v50, %v1659_v34 }
 0x2d7   : > { %v1662_v52 = vpop.f32.mrf.mxu0 }
 0x2d8   : > { %v1332_v53 = vadd.f32 %v1661_v51, %v2250_v37 }
 0x2d9   : > { %v1663_v54 = vpop.f32.mrf.mxu0 }
 0x2da   : > { %1390 = vst [vmem:[%s2253_s8 + $0xb8] sm:$0xff] %v1332_v53  ;;  %v1664_v55 = vadd.f32 %v1663_v54, %v1662_v52 }
 0x2db   : > { %v1665_v56 = vpop.f32.mrf.mxu0 }
 0x2dc   : > { %v1337_v57 = vadd.f32 %v1664_v55, %v2250_v37 }
 0x2dd   : > { %v1666_v58 = vpop.f32.mrf.mxu0 }
 0x2de   : > { %1391 = vst [vmem:[%s2253_s8 + $0xc0] sm:$0xff] %v1337_v57  ;;  %v1667_v59 = vadd.f32 %v1666_v58, %v1665_v56 }
 0x2df   : > { %v1668_v60 = vpop.f32.mrf.mxu0 }
 0x2e0   : > { %v1340_v61 = vadd.f32 %v1667_v59, %v2250_v37 }
 0x2e1   : > { %v1669_v62 = vpop.f32.mrf.mxu0 }
 0x2e2   : > { %1392 = vst [vmem:[%s2253_s8 + $0xc8] sm:$0xff] %v1340_v61  ;;  %v1670_v63 = vadd.f32 %v1669_v62, %v1668_v60 }
 0x2e3   : > { %v1671_v0 = vpop.f32.mrf.mxu0 }
 0x2e4   : > { %v1345_v1 = vadd.f32 %v1670_v63, %v2250_v37 }
 0x2e5   : > { %v1672_v2 = vpop.f32.mrf.mxu0 }
 0x2e6   : > { %1393 = vst [vmem:[%s2253_s8 + $0xd0] sm:$0xff] %v1345_v1  ;;  %v1673_v3 = vadd.f32 %v1672_v2, %v1671_v0 }
 0x2e7   : > { %v1674_v4 = vpop.f32.mrf.mxu0 }
 0x2e8   : > { %v1348_v5 = vadd.f32 %v1673_v3, %v2250_v37 }
 0x2e9   : > { %v1675_v6 = vpop.f32.mrf.mxu0 }
 0x2ea   : > { %1394 = vst [vmem:[%s2253_s8 + $0xd8] sm:$0xff] %v1348_v5  ;;  %v1676_v7 = vadd.f32 %v1675_v6, %v1674_v4 }
 0x2eb   : > { %v1677_v8 = vpop.f32.mrf.mxu0 }
 0x2ec   : > { %v1353_v9 = vadd.f32 %v1676_v7, %v2250_v37 }
 0x2ed   : > { %v1678_v10 = vpop.f32.mrf.mxu0 }
 0x2ee   : > { %1395 = vst [vmem:[%s2253_s8 + $0xe0] sm:$0xff] %v1353_v9  ;;  %v1679_v11 = vadd.f32 %v1678_v10, %v1677_v8 }
 0x2ef   : > { %v1680_v12 = vpop.f32.mrf.mxu0 }
 0x2f0   : > { %v1356_v13 = vadd.f32 %v1679_v11, %v2250_v37 }
 0x2f1   : > { %v1681_v14 = vpop.f32.mrf.mxu0 }
 0x2f2   : > { %1396 = vst [vmem:[%s2253_s8 + $0xe8] sm:$0xff] %v1356_v13  ;;  %v1682_v15 = vadd.f32 %v1681_v14, %v1680_v12 }
 0x2f3   : > { %v1683_v16 = vpop.f32.mrf.mxu0 }
 0x2f4   : > { %v1361_v17 = vadd.f32 %v1682_v15, %v2250_v37 }
 0x2f5   : > { %v1684_v18 = vpop.f32.mrf.mxu0 }
 0x2f6   : > { %1397 = vst [vmem:[%s2253_s8 + $0xf0] sm:$0xff] %v1361_v17  ;;  %v1685_v19 = vadd.f32 %v1684_v18, %v1683_v16 }
 0x2f8   : > { %v1364_v20 = vadd.f32 %v1685_v19, %v2250_v37 }
 0x2fa   : > { %1398 = vst [vmem:[%s2253_s8 + $0xf8] sm:$0xff] %v1364_v20 }
 0x2fb   : > { %1839 = shalt.err (!%p1836_p3)
}
 0x2fc   : > { %s1840_s21 = scalar_lea.hbm %s2321_s16, 4096  ;;  %s1844_s29 = scalar_lea.hbm %s2376_s7, 16384 }
 0x2fd   : > { %p1841_p4 = scmp.ne.s32.totalorder %s2321_s16, %s1840_s21  ;;  %p1845_p9 = scmp.lt.s32.totalorder %s2321_s16, %s2376_s7 }
 0x2fe   : > { %p1846_p10 = scmp.lt.s32.totalorder %s1844_s29, %s1840_s21 }
 0x2ff   : > { %p1842_p7 = pnand %p1841_p4, %p1970_p5 }
 0x300   : > { %p1847_p11 = por %p1846_p10, %p1845_p9 }
 0x301   : > { %p1843_p8 = pneg %p1842_p7 }
 0x303   : > { %p1848_p12 = pnand %p1847_p11, %p1843_p8 }
 0x305   : > { %1851 = shalt.err (!%p1848_p12)
}
 0x306   : > { %s1890_s14 = smov 128   ;;  %s1891_s15 = smov 8  }
 0x307   : > { %1726 = dma.vmem_to_hbm [thread:$0]  (%p1970_p5), %s2323_s13, 4096, %s2321_s16, %s2329_s17, %s1890_s14, %s1890_s14, %s1891_s15  }
 0x308 PF: > { %p1732_p13 = scmp.ge.s32.totalorder %s1886_s27, 2  ;;  %s1428_s28 = sand.u32 1, %s1874_s24  }
 0x309   : > { %s1429_s18 = scalar_lea.sflag [#allocation3], %s1428_s28 }
 0x30a   : > { %p1729_p0 = pnand %p1732_p13, %p1974_p6 }
 0x30c   : > { %p1730_p1 = pneg %p1729_p0 }
 0x30e   : > { %1869 = dma.done.wait (%p1730_p1), %s1429_s18, 4096  }
 0x30f   : > { %1871 = vsyncadd (%p1730_p1), %s1429_s18, 4294963200  ;;  %p17_p2 = scmp.ge.s32.totalorder %s1957_s30, 6   ;;  %s2379_s24 = smov %s1878_s25 }
 0x310   : > { %s2380_s25 = smov %s1882_s26  ;;  %s2381_s26 = smov %s1968_s10 }
 0x311   : > { %s2382_s27 = smov %s1957_s30  ;;  %19 = sbr.rel (!%p17_p2) target bundleno = 3 (0x3), region = 83 }
 0x316   :  { %1434 = vsyncpa [#allocation3], 1 }
 0x317   :  { %1436 = vsyncpa [#allocation3 + $0x1], 1 }

</bundles_post_ra>
